<compile_context>
chip_gen: v5e
topology: v5e:2x2
jax: 0.10.0
libtpu: 0.0.40
codegen_flags: <defaults>
</compile_context>

<pallas_src>
import jax
import jax.numpy as jnp
from jax.experimental import pallas as pl
from jax.experimental.pallas import tpu as pltpu


def _round_up(x, m):
    return (x + m - 1) // m * m


# ---------------------------------------------------------------------------
# Fused per-layer Pallas kernel: relu(M_big @ patches_big)
# ---------------------------------------------------------------------------
def _sage_layer_kernel(w_ref, p_ref, o_ref):
    """One SAGEConv('mean') + ReLU layer on one lane-tile of the spatial axis.

    w_ref : [N*OC, NKp]  bf16  combined weight (self conv + A-weighted neighbour
                               conv for every (dst, src) node pair)
    p_ref : [NKp,  ts ]  bf16  im2col patches, node axis folded into contraction
    o_ref : [N*OC, ts ]  f32   output block (node-major, then out-channel)
    """
    o_ref[...] = jnp.maximum(
        jnp.dot(w_ref[...], p_ref[...], preferred_element_type=jnp.float32),
        0.0,
    )


def sage_conv_relu(a_norm, x, ws, wn, *, ksize=3, lane_tile=1024):
    """relu(Conv_self(x) + Conv_neigh(mean_{u in N(v)} x_u)); NCHW in / NCHW out.

    Both conv branches and the mean aggregation are linear over the node axis,
    so they are folded into one block weight M = I (x) W_self + A (x) W_neigh
    and the layer is a single matmul against node-stacked im2col patches.
    """
    N, C, H, W = x.shape
    OC, K = ws.shape                      # K = C * ksize * ksize
    OH, OW = H - ksize + 1, W - ksize + 1
    S = OH * OW
    NK = N * K
    NKp = _round_up(NK, 16)               # bf16 sublane packing only
    NOC = N * OC

    # im2col glue: [N, C*k*k, OH*OW]; (c, ki, kj) ordering matches
    # weight.reshape(OC, C*k*k).  Node axis folds into the contraction
    # (sublane) axis; the big spatial axis is last -> lane dimension.
    cols = [x[:, :, i:i + OH, j:j + OW]
            for i in range(ksize) for j in range(ksize)]
    patches = jnp.stack(cols, axis=2).reshape(NK, S).astype(jnp.bfloat16)
    if NKp != NK:
        # Tiny zero-pad of the contraction dim — contributes exactly 0.
        patches = jnp.pad(patches, ((0, NKp - NK), (0, 0)))

    # Combined block weight (tiny, built per call since A_norm is runtime data):
    #   M[v*OC+o, u*K+k] = delta(v,u)*Ws[o,k] + A[v,u]*Wn[o,k]
    eye = jnp.eye(N, dtype=jnp.float32)
    m_big = (eye[:, None, :, None] * ws[None, :, None, :]
             + a_norm[:, None, :, None] * wn[None, :, None, :])
    m_big = m_big.reshape(NOC, NK).astype(jnp.bfloat16)
    if NKp != NK:
        m_big = jnp.pad(m_big, ((0, 0), (0, NKp - NK)))

    # Tile only the large spatial lane axis; these layer sizes all fit in a
    # single full-extent block (biggest tile that fits VMEM).  Larger spatial
    # slabs split into 1024-wide lane tiles on a "parallel" axis (megacore).
    ts = S if S <= lane_tile else lane_tile
    grid = (pl.cdiv(S, ts),)

    out = pl.pallas_call(
        _sage_layer_kernel,
        out_shape=jax.ShapeDtypeStruct((NOC, S), jnp.float32),
        grid_spec=pltpu.PrefetchScalarGridSpec(
            num_scalar_prefetch=0,
            grid=grid,
            in_specs=[
                pl.BlockSpec((NOC, NKp), lambda j: (0, 0)),   # combined weight
                pl.BlockSpec((NKp, ts), lambda j: (0, j)),    # stacked patches
            ],
            out_specs=pl.BlockSpec((NOC, ts), lambda j: (0, j)),
        ),
        compiler_params=pltpu.CompilerParams(
            dimension_semantics=("parallel",),
        ),
    )(m_big, patches)

    return out.reshape(N, OC, OH, OW)


# ---------------------------------------------------------------------------
# Plain-JAX glue
# ---------------------------------------------------------------------------
# TODO(synk): im2col / MaxPool2d / Flatten are kept as plain-JAX strided-slice /
# reshape / max glue (memory layout ops), not fused into the Pallas layer kernel.
def maxpool2(x):
    """2x2 max pool, stride 2, NCHW (H, W even at every pool site here)."""
    N, C, H, W = x.shape
    return x.reshape(N, C, H // 2, 2, W // 2, 2).max(axis=(3, 5))


def graphsage_forward(a_norm, in_feat, params):
    h = sage_conv_relu(a_norm, in_feat, *params["conv1"])
    h = maxpool2(h)
    h = sage_conv_relu(a_norm, h, *params["conv2"])
    h = maxpool2(h)
    h = sage_conv_relu(a_norm, h, *params["conv3"])
    h = maxpool2(h)
    return h.reshape(h.shape[0], -1)                          # Flatten


# ---------------------------------------------------------------------------
# Parameters
# ---------------------------------------------------------------------------
def init_params(key, h_feats):
    def conv_pair(key, in_c, out_c, k=3):
        k1, k2 = jax.random.split(key)
        scale = 1.0 / jnp.sqrt(in_c * k * k)
        w_self = jax.random.normal(k1, (out_c, in_c, k, k), jnp.float32) * scale
        w_neigh = jax.random.normal(k2, (out_c, in_c, k, k), jnp.float32) * scale
        return w_self, w_neigh

    k1, k2, k3 = jax.random.split(key, 3)
    return {
        "conv1": conv_pair(k1, 1, h_feats),
        "conv2": conv_pair(k2, h_feats, h_feats * 2),
        "conv3": conv_pair(k3, h_feats * 2, h_feats * 4),
    }


def prepare_params(params):
    """Hoisted once: flatten conv weights to [OC, C*k*k] (f32; the per-layer
    kron-combine with A_norm casts the MXU operand to bf16 at call time)."""
    def prep(w):
        return w.reshape(w.shape[0], -1)

    return {name: tuple(prep(w) for w in pair) for name, pair in params.items()}


if __name__ == "__main__":
    key = jax.random.PRNGKey(0)
    k_feat, k_param = jax.random.split(key)

    num_nodes = 4
    h_feats = 4
    H = W = 30   # 30 -> 28 -> 14 -> 12 -> 6 -> 4 -> 2 spatial progression

    # ring graph (undirected), deg = 2 everywhere -> row-normalised adjacency
    adj = jnp.zeros((num_nodes, num_nodes), jnp.float32)
    for v in range(num_nodes):
        u1, u2 = (v - 1) % num_nodes, (v + 1) % num_nodes
        adj = adj.at[v, u1].set(1.0).at[v, u2].set(1.0)
    deg = jnp.clip(adj.sum(axis=1, keepdims=True), 1.0, None)
    a_norm = adj / deg                                        # 'mean' aggregator

    # node features as single-channel images (conv1 expects in_channels = 1)
    in_feat = jax.random.normal(k_feat, (num_nodes, 1, H, W), jnp.float32)
    params = prepare_params(init_params(k_param, h_feats))

    fwd = jax.jit(graphsage_forward)
    out = jax.block_until_ready(fwd(a_norm, in_feat, params))

    expected = (num_nodes, h_feats * 4 * 2 * 2)               # [4, 64]
    assert out.shape == expected, (out.shape, expected)
    assert out.dtype == jnp.float32
    print("KERNEL_OK")
</pallas_src>

<mosaic_0001>
module attributes {stable_mosaic.version = 11 : i64} {
  func.func @_sage_layer_kernel(%arg0: i32, %arg1: memref<16x48xbf16, #tpu.memory_space<vmem>>, %arg2: memref<48x784xbf16, #tpu.memory_space<vmem>>, %arg3: memref<16x784xf32, #tpu.memory_space<vmem>>) attributes {dimension_semantics = [#tpu.dimension_semantics<parallel>], iteration_bounds = array<i64: 1>, scalar_prefetch = 0 : i64, scratch_operands = 0 : i64, tpu.core_type = #tpu.core_type<tc>, window_params = [{pipeline_mode = #tpu.pipeline_mode<synchronous>, transform_indices = @transform_0, window_bounds = array<i64: 16, 48>}, {transform_indices = @transform_1, window_bounds = array<i64: 48, 784>}, {transform_indices = @transform_2, window_bounds = array<i64: 16, 784>}]} {
    %c0 = arith.constant 0 : index
    %c0_0 = arith.constant 0 : index
    %0 = vector.load %arg1[%c0, %c0_0] : memref<16x48xbf16, #tpu.memory_space<vmem>>, vector<16x48xbf16>
    %c0_1 = arith.constant 0 : index
    %c0_2 = arith.constant 0 : index
    %1 = vector.load %arg2[%c0_1, %c0_2] : memref<48x784xbf16, #tpu.memory_space<vmem>>, vector<48x784xbf16>
    %cst = arith.constant dense<0.000000e+00> : vector<16x784xf32>
    %2 = tpu.matmul %0, %1, %cst {dimension_numbers = #tpu.dot_dimension_numbers<[1], [0], [0], [1], [0, 0, 1, 1], [], []>} : vector<16x48xbf16>, vector<48x784xbf16>, vector<16x784xf32> -> vector<16x784xf32>
    %cst_3 = arith.constant 0.000000e+00 : f32
    %3 = vector.broadcast %cst_3 : f32 to vector<16x784xf32>
    %4 = arith.maximumf %2, %3 : vector<16x784xf32>
    %c0_4 = arith.constant 0 : index
    %c0_5 = arith.constant 0 : index
    %5 = vector.load %arg3[%c0_4, %c0_5] : memref<16x784xf32, #tpu.memory_space<vmem>>, vector<16x784xf32>
    tpu.vector_store %arg3[%c0_4, %c0_5], %4 {strides = array<i32>} : memref<16x784xf32, #tpu.memory_space<vmem>>, vector<16x784xf32>,
    return
  }
  func.func @transform_0(%arg0: i32) -> (i32, i32) {
    %c0_i32 = arith.constant 0 : i32
    %c0_i32_0 = arith.constant 0 : i32
    %c0_i32_1 = arith.constant 0 : i32
    return %c0_i32, %c0_i32_0 : i32, i32
  }
  func.func @transform_1(%arg0: i32) -> (i32, i32) {
    %c0_i32 = arith.constant 0 : i32
    %c0_i32_0 = arith.constant 0 : i32
    return %c0_i32, %arg0 : i32, i32
  }
  func.func @transform_2(%arg0: i32) -> (i32, i32) {
    %c0_i32 = arith.constant 0 : i32
    %c0_i32_0 = arith.constant 0 : i32
    return %c0_i32, %arg0 : i32, i32
  }
}

module attributes {stable_mosaic.version = 11 : i64} {
  func.func @_sage_layer_kernel(%arg0: i32, %arg1: memref<32x144xbf16, #tpu.memory_space<vmem>>, %arg2: memref<144x144xbf16, #tpu.memory_space<vmem>>, %arg3: memref<32x144xf32, #tpu.memory_space<vmem>>) attributes {dimension_semantics = [#tpu.dimension_semantics<parallel>], iteration_bounds = array<i64: 1>, scalar_prefetch = 0 : i64, scratch_operands = 0 : i64, tpu.core_type = #tpu.core_type<tc>, window_params = [{pipeline_mode = #tpu.pipeline_mode<synchronous>, transform_indices = @transform_0, window_bounds = array<i64: 32, 144>}, {transform_indices = @transform_1, window_bounds = array<i64: 144, 144>}, {transform_indices = @transform_2, window_bounds = array<i64: 32, 144>}]} {
    %c0 = arith.constant 0 : index
    %c0_0 = arith.constant 0 : index
    %0 = vector.load %arg1[%c0, %c0_0] : memref<32x144xbf16, #tpu.memory_space<vmem>>, vector<32x144xbf16>
    %c0_1 = arith.constant 0 : index
    %c0_2 = arith.constant 0 : index
    %1 = vector.load %arg2[%c0_1, %c0_2] : memref<144x144xbf16, #tpu.memory_space<vmem>>, vector<144x144xbf16>
    %cst = arith.constant dense<0.000000e+00> : vector<32x144xf32>
    %2 = tpu.matmul %0, %1, %cst {dimension_numbers = #tpu.dot_dimension_numbers<[1], [0], [0], [1], [0, 0, 1, 1], [], []>} : vector<32x144xbf16>, vector<144x144xbf16>, vector<32x144xf32> -> vector<32x144xf32>
    %cst_3 = arith.constant 0.000000e+00 : f32
    %3 = vector.broadcast %cst_3 : f32 to vector<32x144xf32>
    %4 = arith.maximumf %2, %3 : vector<32x144xf32>
    %c0_4 = arith.constant 0 : index
    %c0_5 = arith.constant 0 : index
    %5 = vector.load %arg3[%c0_4, %c0_5] : memref<32x144xf32, #tpu.memory_space<vmem>>, vector<32x144xf32>
    tpu.vector_store %arg3[%c0_4, %c0_5], %4 {strides = array<i32>} : memref<32x144xf32, #tpu.memory_space<vmem>>, vector<32x144xf32>,
    return
  }
  func.func @transform_0(%arg0: i32) -> (i32, i32) {
    %c0_i32 = arith.constant 0 : i32
    %c0_i32_0 = arith.constant 0 : i32
    %c0_i32_1 = arith.constant 0 : i32
    return %c0_i32, %c0_i32_0 : i32, i32
  }
  func.func @transform_1(%arg0: i32) -> (i32, i32) {
    %c0_i32 = arith.constant 0 : i32
    %c0_i32_0 = arith.constant 0 : i32
    return %c0_i32, %arg0 : i32, i32
  }
  func.func @transform_2(%arg0: i32) -> (i32, i32) {
    %c0_i32 = arith.constant 0 : i32
    %c0_i32_0 = arith.constant 0 : i32
    return %c0_i32, %arg0 : i32, i32
  }
}

module attributes {stable_mosaic.version = 11 : i64} {
  func.func @_sage_layer_kernel(%arg0: i32, %arg1: memref<64x288xbf16, #tpu.memory_space<vmem>>, %arg2: memref<288x16xbf16, #tpu.memory_space<vmem>>, %arg3: memref<64x16xf32, #tpu.memory_space<vmem>>) attributes {dimension_semantics = [#tpu.dimension_semantics<parallel>], iteration_bounds = array<i64: 1>, scalar_prefetch = 0 : i64, scratch_operands = 0 : i64, tpu.core_type = #tpu.core_type<tc>, window_params = [{pipeline_mode = #tpu.pipeline_mode<synchronous>, transform_indices = @transform_0, window_bounds = array<i64: 64, 288>}, {transform_indices = @transform_1, window_bounds = array<i64: 288, 16>}, {transform_indices = @transform_2, window_bounds = array<i64: 64, 16>}]} {
    %c0 = arith.constant 0 : index
    %c0_0 = arith.constant 0 : index
    %0 = vector.load %arg1[%c0, %c0_0] : memref<64x288xbf16, #tpu.memory_space<vmem>>, vector<64x288xbf16>
    %c0_1 = arith.constant 0 : index
    %c0_2 = arith.constant 0 : index
    %1 = vector.load %arg2[%c0_1, %c0_2] : memref<288x16xbf16, #tpu.memory_space<vmem>>, vector<288x16xbf16>
    %cst = arith.constant dense<0.000000e+00> : vector<64x16xf32>
    %2 = tpu.matmul %0, %1, %cst {dimension_numbers = #tpu.dot_dimension_numbers<[1], [0], [0], [1], [0, 0, 1, 1], [], []>} : vector<64x288xbf16>, vector<288x16xbf16>, vector<64x16xf32> -> vector<64x16xf32>
    %cst_3 = arith.constant 0.000000e+00 : f32
    %3 = vector.broadcast %cst_3 : f32 to vector<64x16xf32>
    %4 = arith.maximumf %2, %3 : vector<64x16xf32>
    %c0_4 = arith.constant 0 : index
    %c0_5 = arith.constant 0 : index
    %5 = vector.load %arg3[%c0_4, %c0_5] : memref<64x16xf32, #tpu.memory_space<vmem>>, vector<64x16xf32>
    tpu.vector_store %arg3[%c0_4, %c0_5], %4 {strides = array<i32>} : memref<64x16xf32, #tpu.memory_space<vmem>>, vector<64x16xf32>,
    return
  }
  func.func @transform_0(%arg0: i32) -> (i32, i32) {
    %c0_i32 = arith.constant 0 : i32
    %c0_i32_0 = arith.constant 0 : i32
    %c0_i32_1 = arith.constant 0 : i32
    return %c0_i32, %c0_i32_0 : i32, i32
  }
  func.func @transform_1(%arg0: i32) -> (i32, i32) {
    %c0_i32 = arith.constant 0 : i32
    %c0_i32_0 = arith.constant 0 : i32
    return %c0_i32, %arg0 : i32, i32
  }
  func.func @transform_2(%arg0: i32) -> (i32, i32) {
    %c0_i32 = arith.constant 0 : i32
    %c0_i32_0 = arith.constant 0 : i32
    return %c0_i32, %arg0 : i32, i32
  }
}

</mosaic_0001>

<bundles_post_ra>
// kernel: graphsage_forward.3
= control target key start
LH: loop header
LB: loop body
LE: loop exit
PB: predicated region body
PF: predicated region fallthrough
CT: control target
= control target key end

     0   :  { %vm151_vm0 = vcmask 392192   ;;  %vm273_vm1 = vcmask 130048   ;;  %s596_s1 = inlined_call_operand.vmem [shape: bf16[48,784], index: 1, kind: input, shape index: {}]   ;;  %s597_s0 = inlined_call_operand.vmem [shape: bf16[16,48], index: 0, kind: input, shape index: {}]   ;;  %s598_s2 = inlined_call_operand.vmem [shape: f32[16,784], index: 2, kind: output, shape index: {}]  }
   0x1   :  { %v348_v0 = vld [vmem:[%s596_s1 + $0x70] sm:$0xf]  ;;  %v399_v1 = vld [vmem:[%s596_s1 + $0x88] sm:$0xf0]  ;;  %v396_v2 = vld [vmem:[%s596_s1 + $0x74] sm:$0xf] }
   0x2   :  { %v349_v3 = vor.u32 %v399_v1, %v348_v0  ;;  %v350_v4 = vld [vmem:[%s596_s1 + $0x8c] sm:$0xf0]  ;;  %v356_v5 = vld [vmem:[%s596_s1 + $0x78] sm:$0xf]  ;;  %v400_v6 = vld [vmem:[%s596_s1 + $0x90] sm:$0xf0] }
   0x3   :  { %v353_v7 = vor.u32 %v396_v2, %v350_v4  ;;  %v357_v8 = vor.u32 %v400_v6, %v356_v5  ;;  %v320_v9 = vld [vmem:[%s596_s1 + $0x38] sm:$0xf]  ;;  %v392_v10 = vld [vmem:[%s596_s1 + $0x50] sm:$0xf0]  ;;  %v389_v11 = vld [vmem:[%s596_s1 + $0x3c] sm:$0xf] }
   0x4   :  { %160 = vmatpush.bf16.msra.mxu0 %v349_v3  ;;  %v321_v12 = vor.u32 %v392_v10, %v320_v9  ;;  %v322_v13 = vld [vmem:[%s596_s1 + $0x54] sm:$0xf0]  ;;  %v328_v14 = vld [vmem:[%s596_s1 + $0x40] sm:$0xf]  ;;  %v393_v15 = vld [vmem:[%s596_s1 + $0x58] sm:$0xf0] }
   0x5   :  { %174 = vmatpush.bf16.msra.mxu1 %v353_v7  ;;  %188 = vmatpush.bf16.msra.mxu2 %v357_v8  ;;  %v325_v16 = vor.u32 %v389_v11, %v322_v13  ;;  %v329_v17 = vor.u32 %v393_v15, %v328_v14  ;;  %v292_v18 = vld [vmem:[%s596_s1] sm:$0xf]  ;;  %v385_v19 = vld [vmem:[%s596_s1 + $0x18] sm:$0xf0]  ;;  %v382_v20 = vld [vmem:[%s596_s1 + $0x4] sm:$0xf] }
   0x6   :  { %v294_v21 = vld [vmem:[%s596_s1 + $0x1c] sm:$0xf0]  ;;  %v300_v22 = vld [vmem:[%s596_s1 + $0x8] sm:$0xf]  ;;  %v386_v23 = vld [vmem:[%s596_s1 + $0x20] sm:$0xf0]  ;;  %v293_v26 = vor.u32 %v385_v19, %v292_v18 }
   0x7   :  { %v397_v24 = vld [vmem:[%s596_s1 + $0x7c] sm:$0xf]  ;;  %v358_v25 = vld [vmem:[%s596_s1 + $0x94] sm:$0xf0]  ;;  %v372_v28 = vld [vmem:[%s596_s1 + $0x88] sm:$0xf]  ;;  %v297_v31 = vor.u32 %v382_v20, %v294_v21  ;;  %v301_v32 = vor.u32 %v386_v23, %v300_v22 }
   0x8   :  { %161 = vmatpush.bf16.msra.mxu0 %v321_v12  ;;  %v361_v27 = vor.u32 %v397_v24, %v358_v25  ;;  %v402_v29 = vld [vmem:[%s596_s1 + $0xa0] sm:$0xf0]  ;;  %v330_v34 = vld [vmem:[%s596_s1 + $0x5c] sm:$0xf0]  ;;  %v383_v35 = vld [vmem:[%s596_s1 + $0xc] sm:$0xf] }
   0x9   :  { %v390_v30 = vld [vmem:[%s596_s1 + $0x44] sm:$0xf]  ;;  %175 = vmatpush.bf16.msra.mxu1 %v325_v16  ;;  %189 = vmatpush.bf16.msra.mxu2 %v329_v17  ;;  %v302_v36 = vld [vmem:[%s596_s1 + $0x24] sm:$0xf0]  ;;  %v373_v37 = vor.u32 %v402_v29, %v372_v28  ;;  %v364_v39 = vld [vmem:[%s596_s1 + $0x80] sm:$0xf] }
   0xa   :  { %v381_v33 = vld [vmem:[%s597_s0] sm:$0xff]  ;;  %202 = vmatpush.bf16.msra.mxu3 %v361_v27  ;;  %v333_v38 = vor.u32 %v390_v30, %v330_v34  ;;  %v401_v40 = vld [vmem:[%s596_s1 + $0x98] sm:$0xf0]  ;;  %v344_v43 = vld [vmem:[%s596_s1 + $0x50] sm:$0xf]  ;;  %v305_v49 = vor.u32 %v383_v35, %v302_v36 }
   0xb   :  { %v398_v41 = vld [vmem:[%s596_s1 + $0x84] sm:$0xf]  ;;  %v366_v42 = vld [vmem:[%s596_s1 + $0x9c] sm:$0xf0]  ;;  %v395_v44 = vld [vmem:[%s596_s1 + $0x68] sm:$0xf0]  ;;  %v365_v47 = vor.u32 %v401_v40, %v364_v39 }
   0xc   :  { %162 = vmatpush.bf16.msra.mxu0 %v293_v26  ;;  %v369_v45 = vor.u32 %v398_v41, %v366_v42  ;;  %v391_v46 = vld [vmem:[%s596_s1 + $0x4c] sm:$0xf]  ;;  %v338_v48 = vld [vmem:[%s596_s1 + $0x64] sm:$0xf0]  ;;  %v345_v50 = vor.u32 %v395_v44, %v344_v43  ;;  %v394_v52 = vld [vmem:[%s596_s1 + $0x60] sm:$0xf0] }
   0xd   :  { %176 = vmatpush.bf16.msra.mxu1 %v297_v31  ;;  %190 = vmatpush.bf16.msra.mxu2 %v301_v32  ;;  %v336_v51 = vld [vmem:[%s596_s1 + $0x48] sm:$0xf]  ;;  %v341_v53 = vor.u32 %v391_v46, %v338_v48  ;;  %v316_v54 = vld [vmem:[%s596_s1 + $0x18] sm:$0xf]  ;;  %v388_v55 = vld [vmem:[%s596_s1 + $0x30] sm:$0xf0] }
   0xe   :  { %203 = vmatpush.bf16.msra.mxu3 %v333_v38  ;;  %v384_v56 = vld [vmem:[%s596_s1 + $0x14] sm:$0xf]  ;;  %v310_v57 = vld [vmem:[%s596_s1 + $0x2c] sm:$0xf0]  ;;  %v337_v58 = vor.u32 %v394_v52, %v336_v51  ;;  %v317_v59 = vor.u32 %v388_v55, %v316_v54  ;;  %v387_v61 = vld [vmem:[%s596_s1 + $0x28] sm:$0xf0] }
   0xf   :  { %374 = vmatmul.msk.bf16.vlgmr.msra.gmra.mxu0 %vm151_vm0, %v381_v33  ;;  %v308_v60 = vld [vmem:[%s596_s1 + $0x10] sm:$0xf]  ;;  %v313_v62 = vor.u32 %v384_v56, %v310_v57 }
  0x10   :  { %375 = vmatmul.msk.bf16.vlgmr.msra.gmra.mxu1 %vm151_vm0, %v381_v33  ;;  %376 = vmatmul.msk.bf16.vlgmr.msra.gmra.mxu2 %vm151_vm0, %v381_v33  ;;  %v309_v63 = vor.u32 %v387_v61, %v308_v60 }
  0x11   :  { %244 = vmatpush.bf16.msrb.mxu2 %v373_v37  ;;  %230 = vmatpush.bf16.msrb.mxu1 %v369_v45 }
  0x12   :  { %216 = vmatpush.bf16.msrb.mxu0 %v365_v47  ;;  %204 = vmatpush.bf16.msra.mxu3 %v305_v49 }
  0x15   :  { %245 = vmatpush.bf16.msrb.mxu2 %v345_v50  ;;  %231 = vmatpush.bf16.msrb.mxu1 %v341_v53 }
  0x16   :  { %377 = vmatmul.msk.bf16.vlgmr.msra.gmra.mxu3 %vm151_vm0, %v381_v33  ;;  %217 = vmatpush.bf16.msrb.mxu0 %v337_v58 }
  0x19   :  { %246 = vmatpush.bf16.msrb.mxu2 %v317_v59  ;;  %232 = vmatpush.bf16.msrb.mxu1 %v313_v62 }
  0x1a   :  { %218 = vmatpush.bf16.msrb.mxu0 %v309_v63 }
  0x1f   :  { %378 = vmatmul.msk.bf16.vlgmr.msrb.gmra.mxu0 %vm151_vm0, %v381_v33 }
  0x20   :  { %379 = vmatmul.msk.bf16.vlgmr.msrb.gmra.mxu1 %vm151_vm0, %v381_v33  ;;  %380 = vmatmul.msk.bf16.vlgmr.msrb.gmra.mxu2 %vm151_vm0, %v381_v33 }
  0x8c   :  { %v164_v0 = vpop.f32.mrf.mxu0 }
  0x8d   :  { %v253_v1 = vmax.f32 %v164_v0, 0.0  ;;  %v178_v2 = vpop.f32.mrf.mxu1 }
  0x8e   :  { %v254_v3 = vmax.f32 %v178_v2, 0.0 }
  0x8f   :  { %267 = vst [vmem:[%s598_s2] sm:$0xff] %v253_v1 }
  0x90   :  { %268 = vst [vmem:[%s598_s2 + $0x8] sm:$0xff] %v254_v3 }
  0x93   :  { %v192_v4 = vpop.f32.mrf.mxu2 }
  0x94   :  { %v255_v5 = vmax.f32 %v192_v4, 0.0  ;;  %v166_v6 = vpop.f32.mrf.mxu0 }
  0x95   :  { %v260_v7 = vmax.f32 %v166_v6, 0.0  ;;  %v180_v8 = vpop.f32.mrf.mxu1 }
  0x96   :  { %269 = vst [vmem:[%s598_s2 + $0x10] sm:$0xff] %v255_v5  ;;  %v261_v9 = vmax.f32 %v180_v8, 0.0 }
  0x97   :  { %275 = vst [vmem:[%s598_s2 + $0x38] sm:$0xff] %v260_v7 }
  0x98   :  { %276 = vst [vmem:[%s598_s2 + $0x40] sm:$0xff] %v261_v9 }
  0x99   :  { %v206_v10 = vpop.f32.mrf.mxu3 }
  0x9a   :  { %v256_v11 = vmax.f32 %v206_v10, 0.0 }
  0x9b   :  { %v194_v12 = vpop.f32.mrf.mxu2 }
  0x9c   :  { %270 = vst [vmem:[%s598_s2 + $0x18] sm:$0xff] %v256_v11  ;;  %v262_v13 = vmax.f32 %v194_v12, 0.0  ;;  %v220_v14 = vpop.f32.mrf.mxu0 }
  0x9d   :  { %v257_v15 = vmax.f32 %v220_v14, 0.0  ;;  %v234_v16 = vpop.f32.mrf.mxu1 }
  0x9e   :  { %277 = vst [vmem:[%s598_s2 + $0x48] sm:$0xff] %v262_v13  ;;  %v258_v17 = vmax.f32 %v234_v16, 0.0 }
  0x9f   :  { %271 = vst [vmem:[%s598_s2 + $0x20] sm:$0xff] %v257_v15 }
  0xa0   :  { %272 = vst [vmem:[%s598_s2 + $0x28] sm:$0xff] %v258_v17 }
  0xa1   :  { %v208_v18 = vpop.f32.mrf.mxu3 }
  0xa2   :  { %v263_v19 = vmax.f32 %v208_v18, 0.0 }
  0xa3   :  { %v248_v20 = vpop.f32.mrf.mxu2 }
  0xa4   :  { %278 = vst [vmem:[%s598_s2 + $0x50] sm:$0xff] %v263_v19  ;;  %v259_v21 = vmax.f32 %v248_v20, 0.0  ;;  %v222_v22 = vpop.f32.mrf.mxu0 }
  0xa5   :  { %v264_v23 = vmax.f32 %v222_v22, 0.0  ;;  %v236_v24 = vpop.f32.mrf.mxu1 }
  0xa6   :  { %274 = vst.msk [vmem:[%s598_s2 + $0x30] sm:$0xff] %vm273_vm1, %v259_v21  ;;  %v265_v25 = vmax.f32 %v236_v24, 0.0 }
  0xa7   :  { %279 = vst [vmem:[%s598_s2 + $0x58] sm:$0xff] %v264_v23 }
  0xa8   :  { %280 = vst [vmem:[%s598_s2 + $0x60] sm:$0xff] %v265_v25 }
  0xab   :  { %v250_v26 = vpop.f32.mrf.mxu2 }
  0xac   :  { %v266_v27 = vmax.f32 %v250_v26, 0.0 }
  0xae   :  { %281 = vst.msk [vmem:[%s598_s2 + $0x68] sm:$0xff] %vm273_vm1, %v266_v27 }

// kernel: graphsage_forward.4
= control target key start
LH: loop header
LB: loop body
LE: loop exit
PB: predicated region body
PF: predicated region fallthrough
CT: control target
= control target key end

     0   :  { %vm142_vm0 = vcmask 130048   ;;  %s538_s1 = inlined_call_operand.vmem [shape: bf16[144,144], index: 1, kind: input, shape index: {}]   ;;  %s539_s0 = inlined_call_operand.vmem [shape: bf16[32,144], index: 0, kind: input, shape index: {}]   ;;  %s540_s2 = inlined_call_operand.vmem [shape: f32[32,144], index: 2, kind: output, shape index: {}]  }
   0x1   :  { %v319_v0 = vld [vmem:[%s538_s1 + $0x70] sm:$0xf]  ;;  %v356_v1 = vld [vmem:[%s538_s1 + $0x74] sm:$0xf0]  ;;  %v355_v2 = vld [vmem:[%s538_s1 + $0x74] sm:$0xf] }
   0x2   :  { %v320_v3 = vor.u32 %v356_v1, %v319_v0  ;;  %v321_v4 = vld [vmem:[%s538_s1 + $0x78] sm:$0xf0]  ;;  %v311_v5 = vld [vmem:[%s538_s1 + $0x60] sm:$0xf]  ;;  %v354_v6 = vld [vmem:[%s538_s1 + $0x64] sm:$0xf0] }
   0x3   :  { %v324_v7 = vor.u32 %v355_v2, %v321_v4  ;;  %v353_v8 = vld [vmem:[%s538_s1 + $0x64] sm:$0xf]  ;;  %v313_v9 = vld [vmem:[%s538_s1 + $0x68] sm:$0xf0]  ;;  %v312_v10 = vor.u32 %v354_v6, %v311_v5  ;;  %v303_v12 = vld [vmem:[%s538_s1 + $0x50] sm:$0xf] }
   0x4   :  { %149 = vmatpush.bf16.msra.mxu0 %v320_v3  ;;  %v316_v11 = vor.u32 %v353_v8, %v313_v9  ;;  %v352_v13 = vld [vmem:[%s538_s1 + $0x54] sm:$0xf0]  ;;  %v351_v14 = vld [vmem:[%s538_s1 + $0x54] sm:$0xf]  ;;  %v305_v15 = vld [vmem:[%s538_s1 + $0x58] sm:$0xf0] }
   0x5   :  { %187 = vmatpush.bf16.msra.mxu2 %v324_v7  ;;  %v304_v16 = vor.u32 %v352_v13, %v303_v12  ;;  %v295_v17 = vld [vmem:[%s538_s1 + $0x40] sm:$0xf]  ;;  %v350_v18 = vld [vmem:[%s538_s1 + $0x44] sm:$0xf0]  ;;  %v308_v19 = vor.u32 %v351_v14, %v305_v15  ;;  %v357_v20 = vld [vmem:[%s538_s1 + $0x84] sm:$0xf] }
   0x6   :  { %v329_v21 = vld [vmem:[%s538_s1 + $0x88] sm:$0xf0]  ;;  %v337_v22 = vld [vmem:[%s539_s0 + $0x4] sm:$0xf]  ;;  %v327_v28 = vld [vmem:[%s538_s1 + $0x80] sm:$0xf]  ;;  %v296_v29 = vor.u32 %v350_v18, %v295_v17 }
   0x7   :  { %v349_v23 = vld [vmem:[%s538_s1 + $0x44] sm:$0xf]  ;;  %v297_v24 = vld [vmem:[%s538_s1 + $0x48] sm:$0xf0]  ;;  %v332_v25 = vor.u32 %v357_v20, %v329_v21  ;;  %v358_v30 = vld [vmem:[%s538_s1 + $0x84] sm:$0xf0] }
   0x8   :  { %150 = vmatpush.bf16.msra.mxu0 %v312_v10  ;;  %v249_v26 = vld [vmem:[%s539_s0 + $0x8] sm:$0xf0]  ;;  %v300_v31 = vor.u32 %v349_v23, %v297_v24  ;;  %v287_v32 = vld [vmem:[%s538_s1 + $0x30] sm:$0xf]  ;;  %v348_v33 = vld [vmem:[%s538_s1 + $0x34] sm:$0xf0]  ;;  %v328_v34 = vor.u32 %v358_v30, %v327_v28 }
   0x9   :  { %188 = vmatpush.bf16.msra.mxu2 %v316_v11  ;;  %v252_v27 = vor.u32 %v337_v22, %v249_v26  ;;  %213 = vmatpush.bf16.msra.mxu3 %v332_v25  ;;  %v347_v35 = vld [vmem:[%s538_s1 + $0x34] sm:$0xf]  ;;  %v289_v36 = vld [vmem:[%s538_s1 + $0x38] sm:$0xf0]  ;;  %v288_v37 = vor.u32 %v348_v33, %v287_v32  ;;  %v279_v39 = vld [vmem:[%s538_s1 + $0x20] sm:$0xf] }
   0xa   :  { %175 = vmatpush.bf16.msra.mxu1 %v328_v34  ;;  %v292_v38 = vor.u32 %v347_v35, %v289_v36  ;;  %v346_v40 = vld [vmem:[%s538_s1 + $0x24] sm:$0xf0]  ;;  %v345_v41 = vld [vmem:[%s538_s1 + $0x24] sm:$0xf]  ;;  %v281_v42 = vld [vmem:[%s538_s1 + $0x28] sm:$0xf0] }
   0xb   :  { %v280_v43 = vor.u32 %v346_v40, %v279_v39  ;;  %v284_v44 = vor.u32 %v345_v41, %v281_v42  ;;  %v271_v45 = vld [vmem:[%s538_s1 + $0x10] sm:$0xf]  ;;  %v344_v46 = vld [vmem:[%s538_s1 + $0x14] sm:$0xf0]  ;;  %v343_v47 = vld [vmem:[%s538_s1 + $0x14] sm:$0xf] }
   0xc   :  { %151 = vmatpush.bf16.msra.mxu0 %v304_v16  ;;  %335 = vmatmul.msk.bf16.vlgmr.msra.gmra.mxu3 %vm142_vm0, %v252_v27  ;;  %v273_v48 = vld [vmem:[%s538_s1 + $0x18] sm:$0xf0]  ;;  %v272_v49 = vor.u32 %v344_v46, %v271_v45  ;;  %v339_v50 = vld [vmem:[%s539_s0 + $0x14] sm:$0xf]  ;;  %v263_v53 = vld [vmem:[%s538_s1] sm:$0xf] }
   0xd   :  { %189 = vmatpush.bf16.msra.mxu2 %v308_v19  ;;  %333 = vmatmul.msk.bf16.vlgmr.msra.gmra.mxu1 %vm142_vm0, %v252_v27  ;;  %v257_v51 = vld [vmem:[%s539_s0 + $0x18] sm:$0xf0]  ;;  %v276_v52 = vor.u32 %v343_v47, %v273_v48  ;;  %v342_v54 = vld [vmem:[%s538_s1 + $0x4] sm:$0xf0]  ;;  %v341_v55 = vld [vmem:[%s538_s1 + $0x4] sm:$0xf] }
   0xe   :  { %v265_v56 = vld [vmem:[%s538_s1 + $0x8] sm:$0xf0]  ;;  %v260_v57 = vor.u32 %v339_v50, %v257_v51  ;;  %v264_v58 = vor.u32 %v342_v54, %v263_v53  ;;  %v247_v59 = vld [vmem:[%s539_s0] sm:$0xf]  ;;  %v338_v60 = vld [vmem:[%s539_s0 + $0x4] sm:$0xf0] }
   0xf   :  { %v268_v61 = vor.u32 %v341_v55, %v265_v56  ;;  %v248_v62 = vor.u32 %v338_v60, %v247_v59  ;;  %v255_v63 = vld [vmem:[%s539_s0 + $0x10] sm:$0xf]  ;;  %v340_v0 = vld [vmem:[%s539_s0 + $0x14] sm:$0xf0] }
  0x10   :  { %152 = vmatpush.bf16.msra.mxu0 %v296_v29  ;;  %v256_v1 = vor.u32 %v340_v0, %v255_v63 }
  0x11   :  { %190 = vmatpush.bf16.msra.mxu2 %v300_v31 }
  0x14   :  { %153 = vmatpush.bf16.msra.mxu0 %v288_v37 }
  0x15   :  { %191 = vmatpush.bf16.msra.mxu2 %v292_v38 }
  0x18   :  { %154 = vmatpush.bf16.msra.mxu0 %v280_v43 }
  0x19   :  { %192 = vmatpush.bf16.msra.mxu2 %v284_v44 }
  0x1c   :  { %155 = vmatpush.bf16.msra.mxu0 %v272_v49  ;;  %336 = vmatmul.msk.bf16.gmra.mxu3 %vm142_vm0, %v260_v57 }
  0x1d   :  { %193 = vmatpush.bf16.msra.mxu2 %v276_v52  ;;  %334 = vmatmul.msk.bf16.gmra.mxu1 %vm142_vm0, %v260_v57 }
  0x20   :  { %156 = vmatpush.bf16.msra.mxu0 %v264_v58 }
  0x21   :  { %194 = vmatpush.bf16.msra.mxu2 %v268_v61 }
  0x23   :  { %157 = vmatmul.bf16.vlgmr.msra.gmra.mxu0 %v248_v62 }
  0x24   :  { %195 = vmatmul.bf16.vlgmr.msra.gmra.mxu2 %v248_v62 }
  0x33   :  { %162 = vmatmul.bf16.gmra.mxu0 %v256_v1 }
  0x34   :  { %200 = vmatmul.bf16.gmra.mxu2 %v256_v1 }
  0x8a   :  { %v177_v2 = vpop.f32.mrf.mxu1 }
  0x8f   :  { %v215_v4 = vpop.f32.mrf.mxu3 }
  0x92   :  { %v179_v7 = vpop.f32.mrf.mxu1 }
  0x97   :  { %v217_v13 = vpop.f32.mrf.mxu3 }
  0x9a   :  { %v182_v15 = vpop.f32.mrf.mxu1 }
  0x9f   :  { %v220_v22 = vpop.f32.mrf.mxu3 }
  0xa0   :  { %v158_v3 = vpop.f32.mrf.mxu0 }
  0xa1   :  { %v178_v5 = vadd.f32 %v177_v2, %v158_v3 }
  0xa2   :  { %v184_v24 = vpop.f32.mrf.mxu1 }
  0xa3   :  { %v225_v6 = vmax.f32 %v178_v5, 0.0 }
  0xa5   :  { %233 = vst [vmem:[%s540_s2] sm:$0xff] %v225_v6 }
  0xa7   :  { %v196_v8 = vpop.f32.mrf.mxu2  ;;  %v222_v30 = vpop.f32.mrf.mxu3 }
  0xa8   :  { %v216_v9 = vadd.f32 %v215_v4, %v196_v8  ;;  %v160_v10 = vpop.f32.mrf.mxu0 }
  0xa9   :  { %v180_v11 = vadd.f32 %v179_v7, %v160_v10 }
  0xaa   :  { %v226_v12 = vmax.f32 %v216_v9, 0.0 }
  0xab   :  { %v227_v14 = vmax.f32 %v180_v11, 0.0 }
  0xac   :  { %234 = vst.msk [vmem:[%s540_s2 + $0x8] sm:$0xff] %vm142_vm0, %v226_v12 }
  0xad   :  { %235 = vst [vmem:[%s540_s2 + $0x10] sm:$0xff] %v227_v14 }
  0xaf   :  { %v198_v16 = vpop.f32.mrf.mxu2 }
  0xb0   :  { %v218_v17 = vadd.f32 %v217_v13, %v198_v16  ;;  %v163_v18 = vpop.f32.mrf.mxu0 }
  0xb1   :  { %v183_v19 = vadd.f32 %v182_v15, %v163_v18 }
  0xb2   :  { %v228_v20 = vmax.f32 %v218_v17, 0.0 }
  0xb3   :  { %v229_v21 = vmax.f32 %v183_v19, 0.0 }
  0xb4   :  { %236 = vst.msk [vmem:[%s540_s2 + $0x18] sm:$0xff] %vm142_vm0, %v228_v20 }
  0xb5   :  { %237 = vst [vmem:[%s540_s2 + $0x20] sm:$0xff] %v229_v21 }
  0xb7   :  { %v201_v23 = vpop.f32.mrf.mxu2 }
  0xb8   :  { %v221_v25 = vadd.f32 %v220_v22, %v201_v23  ;;  %v165_v26 = vpop.f32.mrf.mxu0 }
  0xb9   :  { %v185_v27 = vadd.f32 %v184_v24, %v165_v26 }
  0xba   :  { %v230_v28 = vmax.f32 %v221_v25, 0.0 }
  0xbb   :  { %v231_v29 = vmax.f32 %v185_v27, 0.0 }
  0xbc   :  { %238 = vst.msk [vmem:[%s540_s2 + $0x28] sm:$0xff] %vm142_vm0, %v230_v28 }
  0xbd   :  { %239 = vst [vmem:[%s540_s2 + $0x30] sm:$0xff] %v231_v29 }
  0xbf   :  { %v203_v31 = vpop.f32.mrf.mxu2 }
  0xc0   :  { %v223_v32 = vadd.f32 %v222_v30, %v203_v31 }
  0xc2   :  { %v232_v33 = vmax.f32 %v223_v32, 0.0 }
  0xc4   :  { %240 = vst.msk [vmem:[%s540_s2 + $0x38] sm:$0xff] %vm142_vm0, %v232_v33 }

// kernel: graphsage_forward.5
= control target key start
LH: loop header
LB: loop body
LE: loop exit
PB: predicated region body
PF: predicated region fallthrough
CT: control target
= control target key end

     0   :  { %vm232_vm0 = vcmask 261120   ;;  %vm340_vm1 = vcmask 130048   ;;  %s700_s1 = inlined_call_operand.vmem [shape: bf16[288,16], index: 1, kind: input, shape index: {}]   ;;  %s701_s0 = inlined_call_operand.vmem [shape: bf16[64,288], index: 0, kind: input, shape index: {}]   ;;  %s702_s2 = inlined_call_operand.vmem [shape: f32[64,16], index: 2, kind: output, shape index: {}]  }
   0x1   :  { %v496_v0 = vld [vmem:[%s700_s1 + $0x38] sm:$0xff]  ;;  %v506_v2 = vld [vmem:[%s700_s1 + $0x88] sm:$0xff]  ;;  %v495_v3 = vld [vmem:[%s700_s1 + $0x30] sm:$0xff] }
   0x2   :  { %v504_v1 = vld [vmem:[%s700_s1 + $0x78] sm:$0xff]  ;;  %245 = vmatpush.bf16.msra.mxu0 %v496_v0  ;;  %507 = vmatpush.bf16.msra.mxu3 %v496_v0  ;;  %v503_v4 = vld [vmem:[%s700_s1 + $0x70] sm:$0xff]  ;;  %v505_v5 = vld [vmem:[%s700_s1 + $0x80] sm:$0xff] }
   0x3   :  { %515 = vmatpush.bf16.msra.mxu1 %v504_v1  ;;  %309 = vmatpush.bf16.msra.mxu2 %v506_v2  ;;  %v363_v6 = vld [vmem:[%s701_s0 + $0x8] sm:$0xf]  ;;  %v479_v7 = vld [vmem:[%s701_s0 + $0x10] sm:$0xf0]  ;;  %v493_v11 = vld [vmem:[%s700_s1 + $0x20] sm:$0xff] }
   0x4   :  { %v494_v8 = vld [vmem:[%s700_s1 + $0x28] sm:$0xff]  ;;  %v364_v10 = vor.u32 %v479_v7, %v363_v6  ;;  %v501_v12 = vld [vmem:[%s700_s1 + $0x60] sm:$0xff]  ;;  %v492_v13 = vld [vmem:[%s700_s1 + $0x18] sm:$0xff] }
   0x5   :  { %v502_v9 = vld [vmem:[%s700_s1 + $0x68] sm:$0xff]  ;;  %v500_v14 = vld [vmem:[%s700_s1 + $0x58] sm:$0xff]  ;;  %v491_v15 = vld [vmem:[%s700_s1 + $0x10] sm:$0xff] }
   0x6   :  { %246 = vmatpush.bf16.msra.mxu0 %v495_v3  ;;  %508 = vmatpush.bf16.msra.mxu3 %v495_v3  ;;  %v499_v16 = vld [vmem:[%s700_s1 + $0x50] sm:$0xff]  ;;  %v375_v17 = vld [vmem:[%s701_s0 + $0x20] sm:$0xf]  ;;  %v482_v18 = vld [vmem:[%s701_s0 + $0x28] sm:$0xf0] }
   0x7   :  { %516 = vmatpush.bf16.msra.mxu1 %v503_v4  ;;  %310 = vmatpush.bf16.msra.mxu2 %v505_v5  ;;  %v490_v19 = vld [vmem:[%s700_s1 + $0x8] sm:$0xff]  ;;  %v376_v21 = vor.u32 %v482_v18, %v375_v17  ;;  %v489_v22 = vld [vmem:[%s700_s1] sm:$0xff]  ;;  %v367_v23 = vld [vmem:[%s701_s0 + $0x18] sm:$0xf] }
   0x8   :  { %v498_v20 = vld [vmem:[%s700_s1 + $0x48] sm:$0xff]  ;;  %v481_v24 = vld [vmem:[%s701_s0 + $0x20] sm:$0xf0]  ;;  %v355_v25 = vld [vmem:[%s701_s0] sm:$0xf] }
   0x9   :  { %v478_v26 = vld [vmem:[%s701_s0 + $0x8] sm:$0xf0]  ;;  %v497_v27 = vld [vmem:[%s700_s1 + $0x40] sm:$0xff]  ;;  %v480_v28 = vld [vmem:[%s701_s0 + $0x1c] sm:$0xf]  ;;  %v368_v30 = vor.u32 %v481_v24, %v367_v23 }
   0xa   :  { %247 = vmatpush.bf16.msra.mxu0 %v494_v8  ;;  %509 = vmatpush.bf16.msra.mxu3 %v494_v8  ;;  %v369_v29 = vld [vmem:[%s701_s0 + $0x24] sm:$0xf0]  ;;  %v356_v31 = vor.u32 %v478_v26, %v355_v25  ;;  %v387_v33 = vld [vmem:[%s701_s0 + $0x38] sm:$0xf]  ;;  %v485_v34 = vld [vmem:[%s701_s0 + $0x40] sm:$0xf0] }
   0xb   :  { %517 = vmatpush.bf16.msra.mxu1 %v502_v9  ;;  %473 = vmatmul.msk.bf16.vlgmr.msra.gmra.mxu2 %vm232_vm0, %v364_v10  ;;  %v372_v32 = vor.u32 %v480_v28, %v369_v29  ;;  %v388_v35 = vor.u32 %v485_v34, %v387_v33  ;;  %v379_v36 = vld [vmem:[%s701_s0 + $0x30] sm:$0xf]  ;;  %v484_v37 = vld [vmem:[%s701_s0 + $0x38] sm:$0xf0]  ;;  %v483_v38 = vld [vmem:[%s701_s0 + $0x34] sm:$0xf] }
   0xc   :  { %v381_v39 = vld [vmem:[%s701_s0 + $0x3c] sm:$0xf0]  ;;  %v380_v40 = vor.u32 %v484_v37, %v379_v36  ;;  %v399_v42 = vld [vmem:[%s701_s0 + $0x50] sm:$0xf]  ;;  %v488_v43 = vld [vmem:[%s701_s0 + $0x58] sm:$0xf0] }
   0xd   :  { %v384_v41 = vor.u32 %v483_v38, %v381_v39  ;;  %v400_v44 = vor.u32 %v488_v43, %v399_v42  ;;  %v477_v45 = vld [vmem:[%s701_s0 + $0x4] sm:$0xf]  ;;  %v357_v46 = vld [vmem:[%s701_s0 + $0xc] sm:$0xf0]  ;;  %v391_v48 = vld [vmem:[%s701_s0 + $0x48] sm:$0xf] }
   0xe   :  { %248 = vmatpush.bf16.msra.mxu0 %v493_v11  ;;  %510 = vmatpush.bf16.msra.mxu3 %v493_v11  ;;  %v360_v47 = vor.u32 %v477_v45, %v357_v46  ;;  %v487_v49 = vld [vmem:[%s701_s0 + $0x50] sm:$0xf0]  ;;  %v486_v50 = vld [vmem:[%s701_s0 + $0x4c] sm:$0xf]  ;;  %v393_v51 = vld [vmem:[%s701_s0 + $0x54] sm:$0xf0] }
   0xf   :  { %518 = vmatpush.bf16.msra.mxu1 %v501_v12  ;;  %v392_v52 = vor.u32 %v487_v49, %v391_v48  ;;  %v396_v53 = vor.u32 %v486_v50, %v393_v51 }
  0x12   :  { %249 = vmatpush.bf16.msra.mxu0 %v492_v13  ;;  %511 = vmatpush.bf16.msra.mxu3 %v492_v13 }
  0x13   :  { %519 = vmatpush.bf16.msra.mxu1 %v500_v14 }
  0x16   :  { %250 = vmatpush.bf16.msra.mxu0 %v491_v15  ;;  %512 = vmatpush.bf16.msra.mxu3 %v491_v15 }
  0x17   :  { %520 = vmatpush.bf16.msra.mxu1 %v499_v16 }
  0x1a   :  { %251 = vmatpush.bf16.msra.mxu0 %v490_v19  ;;  %513 = vmatpush.bf16.msra.mxu3 %v490_v19 }
  0x1b   :  { %521 = vmatpush.bf16.msra.mxu1 %v498_v20  ;;  %474 = vmatmul.msk.bf16.gmra.mxu2 %vm232_vm0, %v376_v21 }
  0x1e   :  { %252 = vmatpush.bf16.msra.mxu0 %v489_v22  ;;  %514 = vmatpush.bf16.msra.mxu3 %v489_v22 }
  0x1f   :  { %522 = vmatpush.bf16.msra.mxu1 %v497_v27 }
  0x21   :  { %258 = vmatmul.bf16.vlgmr.msra.gmra.mxu3 %v368_v30  ;;  %253 = vmatmul.bf16.vlgmr.msra.gmra.mxu0 %v356_v31 }
  0x22   :  { %274 = vmatpush.bf16.msrb.mxu0 %v504_v1  ;;  %287 = vmatmul.bf16.vlgmr.msra.gmra.mxu1 %v372_v32 }
  0x26   :  { %275 = vmatpush.bf16.msrb.mxu0 %v503_v4 }
  0x2a   :  { %276 = vmatpush.bf16.msrb.mxu0 %v502_v9 }
  0x2b   :  { %475 = vmatmul.msk.bf16.gmra.mxu2 %vm232_vm0, %v388_v35 }
  0x2e   :  { %277 = vmatpush.bf16.msrb.mxu0 %v501_v12 }
  0x31   :  { %263 = vmatmul.bf16.gmra.mxu3 %v380_v40 }
  0x32   :  { %278 = vmatpush.bf16.msrb.mxu0 %v500_v14  ;;  %292 = vmatmul.bf16.gmra.mxu1 %v384_v41 }
  0x36   :  { %279 = vmatpush.bf16.msrb.mxu0 %v499_v16 }
  0x3a   :  { %280 = vmatpush.bf16.msrb.mxu0 %v498_v20 }
  0x3b   :  { %476 = vmatmul.msk.bf16.gmra.mxu2 %vm232_vm0, %v400_v44 }
  0x3e   :  { %281 = vmatpush.bf16.msrb.mxu0 %v497_v27 }
  0x41   :  { %282 = vmatmul.bf16.vlgmr.msrb.gmra.mxu0 %v360_v47  ;;  %268 = vmatmul.bf16.gmra.mxu3 %v392_v52 }
  0x42   :  { %297 = vmatmul.bf16.gmra.mxu1 %v396_v53 }
  0x8e   :  { %v312_v54 = vpop.f32.mrf.mxu2 }
  0x96   :  { %v314_v55 = vpop.f32.mrf.mxu2 }
  0x9e   :  { %v317_v56 = vpop.f32.mrf.mxu2  ;;  %v254_v63 = vpop.f32.mrf.mxu0 }
  0x9f   :  { %v288_v57 = vpop.f32.mrf.mxu1 }
  0xa4   :  { %v259_v58 = vpop.f32.mrf.mxu3 }
  0xa5   :  { %v289_v59 = vadd.f32 %v288_v57, %v259_v58 }
  0xa6   :  { %v319_v60 = vpop.f32.mrf.mxu2  ;;  %v256_v7 = vpop.f32.mrf.mxu0 }
  0xa7   :  { %v318_v61 = vadd.f32 %v317_v56, %v289_v59  ;;  %v290_v62 = vpop.f32.mrf.mxu1 }
  0xa9   :  { %v334_v0 = vmax.f32 %v318_v61, 0.0 }
  0xab   :  { %343 = vst.msk [vmem:[%s702_s2 + $0x10] sm:$0xff] %vm340_vm1, %v334_v0 }
  0xac   :  { %v261_v1 = vpop.f32.mrf.mxu3 }
  0xad   :  { %v291_v2 = vadd.f32 %v290_v62, %v261_v1 }
  0xae   :  { %v322_v5 = vpop.f32.mrf.mxu2 }
  0xaf   :  { %v320_v3 = vadd.f32 %v319_v60, %v291_v2  ;;  %v293_v4 = vpop.f32.mrf.mxu1 }
  0xb1   :  { %v335_v6 = vmax.f32 %v320_v3, 0.0 }
  0xb3   :  { %344 = vst.msk [vmem:[%s702_s2 + $0x18] sm:$0xff] %vm340_vm1, %v335_v6 }
  0xb4   :  { %v264_v8 = vpop.f32.mrf.mxu3 }
  0xb5   :  { %v294_v9 = vadd.f32 %v293_v4, %v264_v8 }
  0xb6   :  { %v324_v13 = vpop.f32.mrf.mxu2 }
  0xb7   :  { %v323_v10 = vadd.f32 %v322_v5, %v294_v9  ;;  %v295_v11 = vpop.f32.mrf.mxu1 }
  0xb9   :  { %v336_v12 = vmax.f32 %v323_v10, 0.0 }
  0xbb   :  { %345 = vst.msk [vmem:[%s702_s2 + $0x20] sm:$0xff] %vm340_vm1, %v336_v12 }
  0xbc   :  { %v266_v16 = vpop.f32.mrf.mxu3 }
  0xbd   :  { %v296_v17 = vadd.f32 %v295_v11, %v266_v16 }
  0xbe   :  { %v283_v14 = vpop.f32.mrf.mxu0  ;;  %v327_v24 = vpop.f32.mrf.mxu2 }
  0xbf   :  { %v284_v15 = vadd.f32 %v283_v14, %v254_v63  ;;  %v325_v19 = vadd.f32 %v324_v13, %v296_v17  ;;  %v298_v22 = vpop.f32.mrf.mxu1 }
  0xc1   :  { %v313_v18 = vadd.f32 %v312_v54, %v284_v15  ;;  %v337_v21 = vmax.f32 %v325_v19, 0.0 }
  0xc3   :  { %v332_v20 = vmax.f32 %v313_v18, 0.0  ;;  %346 = vst.msk [vmem:[%s702_s2 + $0x28] sm:$0xff] %vm340_vm1, %v337_v21 }
  0xc4   :  { %v269_v26 = vpop.f32.mrf.mxu3 }
  0xc5   :  { %341 = vst.msk [vmem:[%s702_s2] sm:$0xff] %vm340_vm1, %v332_v20  ;;  %v299_v27 = vadd.f32 %v298_v22, %v269_v26 }
  0xc6   :  { %v285_v23 = vpop.f32.mrf.mxu0  ;;  %v329_v35 = vpop.f32.mrf.mxu2 }
  0xc7   :  { %v286_v25 = vadd.f32 %v285_v23, %v256_v7  ;;  %v328_v29 = vadd.f32 %v327_v24, %v299_v27  ;;  %v300_v32 = vpop.f32.mrf.mxu1 }
  0xc9   :  { %v315_v28 = vadd.f32 %v314_v55, %v286_v25  ;;  %v338_v31 = vmax.f32 %v328_v29, 0.0 }
  0xcb   :  { %v333_v30 = vmax.f32 %v315_v28, 0.0  ;;  %347 = vst.msk [vmem:[%s702_s2 + $0x30] sm:$0xff] %vm340_vm1, %v338_v31 }
  0xcc   :  { %v271_v33 = vpop.f32.mrf.mxu3 }
  0xcd   :  { %342 = vst.msk [vmem:[%s702_s2 + $0x8] sm:$0xff] %vm340_vm1, %v333_v30  ;;  %v301_v34 = vadd.f32 %v300_v32, %v271_v33 }
  0xcf   :  { %v330_v36 = vadd.f32 %v329_v35, %v301_v34 }
  0xd1   :  { %v339_v37 = vmax.f32 %v330_v36, 0.0 }
  0xd3   :  { %348 = vst.msk [vmem:[%s702_s2 + $0x38] sm:$0xff] %vm340_vm1, %v339_v37 }

</bundles_post_ra>
